<compile_context>
chip_gen: v6e
topology: v6e:2x2x1
jax: 0.10.0
libtpu: 0.0.40
codegen_flags: <defaults>
</compile_context>

<pallas_src>
import functools

import jax
import jax.numpy as jnp
from jax import lax
from jax.experimental import pallas as pl
from jax.experimental.pallas import tpu as pltpu

NEG_FILL = -1e30   # finite stand-in for -inf (exp underflows to 0, no NaN risk)
_NORM_EPS = 1e-12  # matches F.normalize eps clamp


def _l2_normalize(x):
    nrm = jnp.sqrt(jnp.sum(x * x, axis=1, keepdims=True))
    return x / jnp.maximum(nrm, _NORM_EPS)


def _row_loss(sim, pos, self_sim, *, row0, batch_size, n_total, top_k):
    """Per-row NT-Xent loss.

    sim:      (R, N) similarity logits (already divided by temperature, f32).
    pos:      (R, 1) positive logit.
    self_sim: (R, 1) self-similarity logit (consistent with sim's diagonal).
    row0:     global row index of sim's first row (Python int or traced scalar).
    """
    if top_k is None:
        # All negatives: logsumexp over the full row (positive counted once),
        # then subtract the self term analytically.  self_sim + 1 is an upper
        # bound on every logit of a normalized row, so exp cannot overflow and
        # no full-row max (XLU reduction) is needed.
        m = self_sim + 1.0
        denom = (jnp.sum(jnp.exp(sim - m), axis=1, keepdims=True)
                 - jnp.exp(self_sim - m))
        return m + jnp.log(denom) - pos

    # Top-k hardest negatives via k rounds of (row-max, remove).  Exactly-tied
    # negatives are removed together (counted once) -- can diverge from
    # torch.topk only on exact ties.
    rows = sim.shape[0]
    row = lax.broadcasted_iota(jnp.int32, (rows, n_total), 0) + row0
    col = lax.broadcasted_iota(jnp.int32, (rows, n_total), 1)
    partner = jnp.where(row < batch_size, row + batch_size, row - batch_size)
    mask = (col == row) | (col == partner)
    neg_cur = jnp.where(mask, NEG_FILL, sim)

    vals = []
    for t in range(top_k):                          # static -> unrolled
        cur = jnp.max(neg_cur, axis=1, keepdims=True)
        vals.append(cur)
        if t + 1 < top_k:                           # last rewrite is not needed
            neg_cur = jnp.where(neg_cur == cur, NEG_FILL, neg_cur)
    # TODO(synk): for large k, extract maxima from 128-lane column chunks with
    # per-chunk running maxima to cut the k full-slab rewrite passes.

    m = jnp.maximum(pos, vals[0])                   # vals[0] == rowmax(negatives)
    acc = jnp.zeros_like(m)
    for v in vals:
        acc = acc + jnp.exp(v - m)
    denom = jnp.exp(pos - m) + acc
    return m + jnp.log(denom) - pos


# ----------------------------------------------------------------------------
# Path 1: monolithic body (small N)
# ----------------------------------------------------------------------------
def _ntxent_kernel_single(zi_ref, zj_ref, loss_ref, *, temperature, top_k,
                          batch_size, mm_dtype):
    inv_t = 1.0 / temperature
    n = 2 * batch_size

    zi = _l2_normalize(zi_ref[...].astype(jnp.float32))
    zj = _l2_normalize(zj_ref[...].astype(jnp.float32))
    pos_half = jnp.sum(zi * zj, axis=1, keepdims=True) * inv_t            # (B,1)
    pos = jnp.concatenate([pos_half, pos_half], axis=0)                   # (N,1)

    z_mm = jnp.concatenate([zi, zj], axis=0).astype(mm_dtype)             # (N,D)
    z_f = z_mm.astype(jnp.float32)
    self_sim = jnp.sum(z_f * z_f, axis=1, keepdims=True) * inv_t          # (N,1)

    # (N,N) similarity on the MXU; single invocation -> relayout happens once.
    sim = lax.dot_general(z_mm, z_mm, dimension_numbers=(((1,), (1,)), ((), ())),
                          preferred_element_type=jnp.float32) * inv_t

    loss_rows = _row_loss(sim, pos, self_sim, row0=0, batch_size=batch_size,
                          n_total=n, top_k=top_k)
    loss_ref[0] = jnp.mean(loss_rows)


def _call_monolithic(z_i, z_j, temperature, top_k, mm_bf16, vmem_limit):
    b, _ = z_i.shape
    mm_dtype = jnp.bfloat16 if mm_bf16 else jnp.float32
    kernel = functools.partial(
        _ntxent_kernel_single, temperature=float(temperature), top_k=top_k,
        batch_size=int(b), mm_dtype=mm_dtype)
    out = pl.pallas_call(
        kernel,
        out_shape=jax.ShapeDtypeStruct((1,), jnp.float32),
        in_specs=[pl.BlockSpec(memory_space=pltpu.MemorySpace.VMEM),
                  pl.BlockSpec(memory_space=pltpu.MemorySpace.VMEM)],
        out_specs=pl.BlockSpec(memory_space=pltpu.MemorySpace.SMEM),
        compiler_params=pltpu.CompilerParams(vmem_limit_bytes=vmem_limit),
    )(z_i, z_j)
    return out[0]


# ----------------------------------------------------------------------------
# Path 2: prep kernel + tiled "parallel" grid over query-row tiles (large N)
# ----------------------------------------------------------------------------
def _prep_kernel(z_ref, zp_ref, zn_ref, pos_ref, self_ref, *, inv_t, mm_dtype):
    zq = _l2_normalize(z_ref[...].astype(jnp.float32))      # (TR, D) f32
    zp = _l2_normalize(zp_ref[...].astype(jnp.float32))     # partner rows
    zq_mm = zq.astype(mm_dtype)
    zn_ref[...] = zq_mm
    # pos from full-f32 normalized rows (numerator accuracy); self_sim from the
    # mm-dtype values so it matches the matmul diagonal term it later cancels.
    pos_ref[...] = jnp.sum(zq * zp, axis=1, keepdims=True) * inv_t
    zq_mm_f = zq_mm.astype(jnp.float32)
    self_ref[...] = jnp.sum(zq_mm_f * zq_mm_f, axis=1, keepdims=True) * inv_t


def _call_prep(z, z_part, temperature, block_rows, mm_dtype, vmem_limit):
    n, d = z.shape
    nt = n // block_rows
    kernel = functools.partial(_prep_kernel, inv_t=1.0 / float(temperature),
                               mm_dtype=mm_dtype)
    grid_spec = pltpu.PrefetchScalarGridSpec(
        num_scalar_prefetch=0,
        grid=(nt,),
        in_specs=[pl.BlockSpec((block_rows, d), lambda t: (t, 0)),
                  pl.BlockSpec((block_rows, d), lambda t: (t, 0))],
        out_specs=(pl.BlockSpec((block_rows, d), lambda t: (t, 0)),
                   pl.BlockSpec((block_rows, 1), lambda t: (t, 0)),
                   pl.BlockSpec((block_rows, 1), lambda t: (t, 0))),
    )
    return pl.pallas_call(
        kernel,
        out_shape=(jax.ShapeDtypeStruct((n, d), mm_dtype),
                   jax.ShapeDtypeStruct((n, 1), jnp.float32),
                   jax.ShapeDtypeStruct((n, 1), jnp.float32)),
        grid_spec=grid_spec,
        compiler_params=pltpu.CompilerParams(
            dimension_semantics=("parallel",), vmem_limit_bytes=vmem_limit),
    )(z, z_part)


def _ntxent_kernel_tiled(znt_ref, zq_ref, pos_ref, self_ref, out_ref, *,
                         temperature, top_k, batch_size, block_rows):
    inv_t = 1.0 / temperature
    n = 2 * batch_size
    row0 = pl.program_id(0) * block_rows
    # (TQ,N) similarity slab in canonical (M,K)x(K,N) MXU form against the
    # resident pre-transposed znT -> no per-step relayout of the big operand.
    sim = lax.dot_general(zq_ref[...], znt_ref[...],
                          dimension_numbers=(((1,), (0,)), ((), ())),
                          preferred_element_type=jnp.float32) * inv_t
    out_ref[...] = _row_loss(sim, pos_ref[...], self_ref[...], row0=row0,
                             batch_size=batch_size, n_total=n, top_k=top_k)


def _call_tiled(z_i, z_j, temperature, top_k, block_rows, mm_bf16, vmem_limit):
    b, d = z_i.shape
    n = 2 * b
    num_tiles = n // block_rows
    mm_dtype = jnp.bfloat16 if mm_bf16 else jnp.float32

    # XLA prologue: concatenated embeddings and their positive partners
    # (row r of z_part is the partner of row r of z).  One-time O(N*D) copies.
    z = jnp.concatenate([z_i, z_j], axis=0)
    z_part = jnp.concatenate([z_j, z_i], axis=0)
    zn, pos, self_sim = _call_prep(z, z_part, temperature, block_rows,
                                   mm_dtype, vmem_limit)
    # One-time transpose (XLA) so every grid step gets a transpose-free RHS.
    znt = jnp.transpose(zn)                                    # (D, N)

    kernel = functools.partial(
        _ntxent_kernel_tiled, temperature=float(temperature), top_k=top_k,
        batch_size=int(b), block_rows=int(block_rows))
    grid_spec = pltpu.PrefetchScalarGridSpec(
        num_scalar_prefetch=0,
        grid=(num_tiles,),
        # TODO(synk): znT only ever uses block (0,0); pipeline_mode=pl.Buffered(1)
        # would halve its VMEM footprint (kept default-buffered for portability).
        in_specs=[pl.BlockSpec((d, n), lambda i: (0, 0)),          # znT resident
                  pl.BlockSpec((block_rows, d), lambda i: (i, 0)),  # zq stream
                  pl.BlockSpec((block_rows, 1), lambda i: (i, 0)),  # pos
                  pl.BlockSpec((block_rows, 1), lambda i: (i, 0))], # self_sim
        out_specs=pl.BlockSpec((block_rows, 1), lambda i: (i, 0)),
    )
    loss_rows = pl.pallas_call(
        kernel,
        out_shape=jax.ShapeDtypeStruct((n, 1), jnp.float32),
        grid_spec=grid_spec,
        compiler_params=pltpu.CompilerParams(
            # No accumulator / init step -> the row-tile axis is embarrassingly
            # parallel; v7x's two TensorCores can split the grid.
            dimension_semantics=("parallel",),
            vmem_limit_bytes=vmem_limit),
    )(znt, zn, pos, self_sim)
    return jnp.mean(loss_rows)


# ----------------------------------------------------------------------------
# Generation-aware VMEM budgeting and tile selection
# ----------------------------------------------------------------------------
def _vmem_caps():
    """Returns (vmem_limit_bytes, planning_budget_bytes) for this generation."""
    cap = 64 << 20
    try:
        cap = int(getattr(pltpu.get_tpu_info(), "vmem_capacity_bytes", cap))
    except Exception:
        pass
    limit = max(32 << 20, cap - (8 << 20))    # headroom for Mosaic internals
    budget = (limit * 3) // 4                 # what tiles are planned against
    return int(limit), int(budget)


def _mono_footprint(b, d, n, top_k, mm_bf16):
    isz = 2 if mm_bf16 else 4
    n_mats = 3 if top_k is None else 6        # live (N,N) f32 temporaries
    return (4 * b * d * 4                     # raw + normalized halves (f32)
            + n * d * (4 + isz)               # concatenated z (f32 + mm dtype)
            + n_mats * n * n * 4
            + (2 << 20))


def _pick_block_rows(batch, n_total, d, row_align, mm_bf16, top_k, budget):
    isz = 2 if mm_bf16 else 4
    n_slabs = 3 if top_k is None else 6       # live (TQ,N) f32 temporaries
    base = 2 * n_total * d * isz              # resident znT (double-buffered)
    for cand in (512, 256, 128, 64, 32, 16, 8):
        if cand % row_align or batch % cand:
            continue
        est = (base
               + 2 * cand * d * isz           # streamed zq tile (double-buffered)
               + n_slabs * cand * n_total * 4
               + (2 << 20))
        if est <= budget:
            return cand
    return None


# ----------------------------------------------------------------------------
# Public wrapper
# ----------------------------------------------------------------------------
def ntxent_loss_hard_negatives(z_i, z_j, temperature=0.5, top_k_negatives=None,
                               *, block_rows="auto", use_bf16_matmul="auto"):
    """Pallas TPU implementation of NTXentLossHardNegatives.forward.

    use_bf16_matmul: True / False / "auto".  "auto" feeds the MXU in bf16 on
    the tiled (large-N) path (recommended on v6e/v7x) and keeps f32 on the
    small monolithic path.  Normalization, positives, self-sim and logsumexp
    are always computed in f32.
    """
    assert z_i.shape == z_j.shape and z_i.ndim == 2
    b, d = z_i.shape
    n = 2 * b

    # Normalize top-k: k >= n-2 is exactly the all-negatives case; k <= 0 means
    # "positives only", whose cross-entropy is identically zero.
    top_k = None
    if top_k_negatives is not None:
        k = int(top_k_negatives)
        if k <= 0:
            return jnp.asarray(0.0, jnp.float32)
        top_k = None if k >= n - 2 else k

    limit, budget = _vmem_caps()
    input_bf16 = (z_i.dtype == jnp.bfloat16) or (z_j.dtype == jnp.bfloat16)

    if block_rows == "auto":
        mono_bf16 = use_bf16_matmul is True
        if _mono_footprint(b, d, n, top_k, mono_bf16) <= budget // 2:
            block_rows = None                     # monolithic is plenty
        else:
            tiled_bf16 = (use_bf16_matmul is True) or (use_bf16_matmul == "auto")
            row_align = 16 if (tiled_bf16 or input_bf16) else 8
            block_rows = _pick_block_rows(b, n, d, row_align, tiled_bf16,
                                          top_k, budget)
            # TODO(synk): pad N (masking padded rows out of the mean) when the
            # batch is not divisible by any aligned tile, instead of falling
            # back to the monolithic path; also pad ragged D to a 128 multiple.

    if block_rows is None:
        mm_bf16 = use_bf16_matmul is True         # "auto" -> f32 on this path
        return _call_monolithic(z_i, z_j, temperature, top_k, mm_bf16, limit)

    block_rows = int(block_rows)
    mm_bf16 = (use_bf16_matmul is True) or (use_bf16_matmul == "auto")
    row_align = 16 if (mm_bf16 or input_bf16) else 8
    if block_rows % row_align or b % block_rows:
        raise ValueError(
            f"block_rows must be a multiple of {row_align} that divides the "
            f"batch size {b}; got {block_rows}")
    return _call_tiled(z_i, z_j, temperature, top_k, block_rows, mm_bf16, limit)


# ----------------------------------------------------------------------------
# Pure-JAX reference (mirrors the PyTorch module) + self-test
# ----------------------------------------------------------------------------
def _reference(z_i, z_j, temperature=0.5, top_k_negatives=None):
    def norm(x):
        return x / jnp.maximum(jnp.linalg.norm(x, axis=1, keepdims=True), 1e-12)

    z = jnp.concatenate([norm(z_i), norm(z_j)], axis=0)
    n = z.shape[0]
    b = n // 2
    sim = (z @ z.T) / temperature
    idx = jnp.arange(n)
    pos_idx = (idx + b) % n
    positives = sim[idx, pos_idx][:, None]
    mask = jnp.eye(n, dtype=bool) | (jnp.arange(n)[None, :] == pos_idx[:, None])
    neg = jnp.where(mask, -jnp.inf, sim)
    k = n - 2 if top_k_negatives is None else min(int(top_k_negatives), n - 2)
    if k > 0:
        negs = jax.lax.top_k(neg, k)[0]
        logits = jnp.concatenate([positives, negs], axis=1)
    else:
        logits = positives
    return jnp.mean(jax.nn.logsumexp(logits, axis=1) - logits[:, 0])


if __name__ == "__main__":
    key = jax.random.PRNGKey(0)
    k1, k2, k3, k4 = jax.random.split(key, 4)

    # Small problem -> monolithic single-invocation path (f32).
    b1, d1 = 8, 32
    zi_s = jax.random.normal(k1, (b1, d1), dtype=jnp.float32)
    zj_s = jax.random.normal(k2, (b1, d1), dtype=jnp.float32)
    out_all = ntxent_loss_hard_negatives(zi_s, zj_s, 0.5, None)
    out_top = ntxent_loss_hard_negatives(zi_s, zj_s, 0.5, 4)
    jax.block_until_ready((out_all, out_top))
    ref_all = _reference(zi_s, zj_s, 0.5, None)
    ref_top = _reference(zi_s, zj_s, 0.5, 4)
    assert jnp.allclose(out_all, ref_all, atol=1e-5, rtol=1e-5), (out_all, ref_all)
    assert jnp.allclose(out_top, ref_top, atol=1e-5, rtol=1e-5), (out_top, ref_top)

    # Larger problem forced onto the tiled path, f32 MXU feed (exactness check).
    b2, d2 = 16, 64
    zi_l = jax.random.normal(k3, (b2, d2), dtype=jnp.float32)
    zj_l = jax.random.normal(k4, (b2, d2), dtype=jnp.float32)
    out_all_t = ntxent_loss_hard_negatives(zi_l, zj_l, 0.5, None,
                                           block_rows=8, use_bf16_matmul=False)
    out_top_t = ntxent_loss_hard_negatives(zi_l, zj_l, 0.5, 5,
                                           block_rows=8, use_bf16_matmul=False)
    jax.block_until_ready((out_all_t, out_top_t))
    ref_all_t = _reference(zi_l, zj_l, 0.5, None)
    ref_top_t = _reference(zi_l, zj_l, 0.5, 5)
    assert jnp.allclose(out_all_t, ref_all_t, atol=1e-5, rtol=1e-5), (out_all_t, ref_all_t)
    assert jnp.allclose(out_top_t, ref_top_t, atol=1e-5, rtol=1e-5), (out_top_t, ref_top_t)

    # Tiled path with the default "auto" policy -> bf16 MXU feed (looser tol).
    out_bf16 = ntxent_loss_hard_negatives(zi_l, zj_l, 0.5, None, block_rows=16)
    out_bf16_k = ntxent_loss_hard_negatives(zi_l, zj_l, 0.5, 5, block_rows=16)
    jax.block_until_ready((out_bf16, out_bf16_k))
    assert jnp.allclose(out_bf16, ref_all_t, atol=0.1, rtol=0.05), (out_bf16, ref_all_t)
    assert jnp.allclose(out_bf16_k, ref_top_t, atol=0.1, rtol=0.05), (out_bf16_k, ref_top_t)

    print("KERNEL_OK")
</pallas_src>

<mosaic_0001>
module attributes {stable_mosaic.version = 11 : i64} {
  func.func @_ntxent_kernel_single(%arg0: memref<8x32xf32, #tpu.memory_space<vmem>>, %arg1: memref<8x32xf32, #tpu.memory_space<vmem>>, %arg2: memref<1xf32, #tpu.memory_space<smem>>) attributes {dimension_semantics = [], scalar_prefetch = 0 : i64, scratch_operands = 0 : i64, tpu.core_type = #tpu.core_type<tc>} {
    %c0 = arith.constant 0 : index
    %c0_0 = arith.constant 0 : index
    %0 = vector.load %arg0[%c0, %c0_0] : memref<8x32xf32, #tpu.memory_space<vmem>>, vector<8x32xf32>
    %1 = arith.mulf %0, %0 : vector<8x32xf32>
    %cst = arith.constant dense<0.000000e+00> : vector<8xf32>
    %2 = vector.multi_reduction <add>, %1, %cst [1] : vector<8x32xf32> to vector<8xf32>
    %3 = vector.shape_cast %2 : vector<8xf32> to vector<8x1xf32>
    %4 = math.sqrt %3 : vector<8x1xf32>
    %cst_1 = arith.constant 9.99999996E-13 : f32
    %5 = vector.broadcast %cst_1 : f32 to vector<8x1xf32>
    %6 = arith.maximumf %4, %5 : vector<8x1xf32>
    %7 = vector.broadcast %6 : vector<8x1xf32> to vector<8x32xf32>
    %8 = arith.divf %0, %7 : vector<8x32xf32>
    %c0_2 = arith.constant 0 : index
    %c0_3 = arith.constant 0 : index
    %9 = vector.load %arg1[%c0_2, %c0_3] : memref<8x32xf32, #tpu.memory_space<vmem>>, vector<8x32xf32>
    %10 = arith.mulf %9, %9 : vector<8x32xf32>
    %cst_4 = arith.constant dense<0.000000e+00> : vector<8xf32>
    %11 = vector.multi_reduction <add>, %10, %cst_4 [1] : vector<8x32xf32> to vector<8xf32>
    %12 = vector.shape_cast %11 : vector<8xf32> to vector<8x1xf32>
    %13 = math.sqrt %12 : vector<8x1xf32>
    %cst_5 = arith.constant 9.99999996E-13 : f32
    %14 = vector.broadcast %cst_5 : f32 to vector<8x1xf32>
    %15 = arith.maximumf %13, %14 : vector<8x1xf32>
    %16 = vector.broadcast %15 : vector<8x1xf32> to vector<8x32xf32>
    %17 = arith.divf %9, %16 : vector<8x32xf32>
    %18 = arith.mulf %8, %17 : vector<8x32xf32>
    %cst_6 = arith.constant dense<0.000000e+00> : vector<8xf32>
    %19 = vector.multi_reduction <add>, %18, %cst_6 [1] : vector<8x32xf32> to vector<8xf32>
    %20 = vector.shape_cast %19 : vector<8xf32> to vector<8x1xf32>
    %cst_7 = arith.constant 2.000000e+00 : f32
    %21 = vector.broadcast %cst_7 : f32 to vector<8x1xf32>
    %22 = arith.mulf %20, %21 : vector<8x1xf32>
    %23 = tpu.concatenate %22, %22 in 0 : vector<8x1xf32>, vector<8x1xf32> -> vector<16x1xf32>
    %24 = tpu.concatenate %8, %17 in 0 : vector<8x32xf32>, vector<8x32xf32> -> vector<16x32xf32>
    %25 = arith.mulf %24, %24 : vector<16x32xf32>
    %cst_8 = arith.constant dense<0.000000e+00> : vector<16xf32>
    %26 = vector.multi_reduction <add>, %25, %cst_8 [1] : vector<16x32xf32> to vector<16xf32>
    %27 = vector.shape_cast %26 : vector<16xf32> to vector<16x1xf32>
    %cst_9 = arith.constant 2.000000e+00 : f32
    %28 = vector.broadcast %cst_9 : f32 to vector<16x1xf32>
    %29 = arith.mulf %27, %28 : vector<16x1xf32>
    %cst_10 = arith.constant dense<0.000000e+00> : vector<16x16xf32>
    %30 = tpu.matmul %24, %24, %cst_10 {dimension_numbers = #tpu.dot_dimension_numbers<[1], [1], [0], [0], [0, 0, 1, 0], [], []>} : vector<16x32xf32>, vector<16x32xf32>, vector<16x16xf32> -> vector<16x16xf32>
    %cst_11 = arith.constant 2.000000e+00 : f32
    %31 = vector.broadcast %cst_11 : f32 to vector<16x16xf32>
    %32 = arith.mulf %30, %31 : vector<16x16xf32>
    %cst_12 = arith.constant 1.000000e+00 : f32
    %33 = vector.broadcast %cst_12 : f32 to vector<16x1xf32>
    %34 = arith.addf %29, %33 : vector<16x1xf32>
    %35 = vector.broadcast %34 : vector<16x1xf32> to vector<16x16xf32>
    %36 = arith.subf %32, %35 : vector<16x16xf32>
    %37 = math.exp %36 : vector<16x16xf32>
    %cst_13 = arith.constant dense<0.000000e+00> : vector<16xf32>
    %38 = vector.multi_reduction <add>, %37, %cst_13 [1] : vector<16x16xf32> to vector<16xf32>
    %39 = vector.shape_cast %38 : vector<16xf32> to vector<16x1xf32>
    %40 = arith.subf %29, %34 : vector<16x1xf32>
    %41 = math.exp %40 : vector<16x1xf32>
    %42 = arith.subf %39, %41 : vector<16x1xf32>
    %43 = math.log %42 : vector<16x1xf32>
    %44 = arith.addf %34, %43 : vector<16x1xf32>
    %45 = arith.subf %44, %23 : vector<16x1xf32>
    %46 = vector.shape_cast %45 : vector<16x1xf32> to vector<1x16x1xf32>
    %cst_14 = arith.constant dense<0.000000e+00> : vector<1xf32>
    %47 = vector.multi_reduction <add>, %46, %cst_14 [1, 2] : vector<1x16x1xf32> to vector<1xf32>
    %48 = vector.shape_cast %47 : vector<1xf32> to vector<1x1x1xf32>
    %49 = vector.extract %48[0, 0, 0] : f32 from vector<1x1x1xf32>
    %cst_15 = arith.constant 1.600000e+01 : f32
    %50 = arith.divf %49, %cst_15 : f32
    %c0_16 = arith.constant 0 : index
    %51 = memref.load %arg2[%c0_16] : memref<1xf32, #tpu.memory_space<smem>>
    memref.store %50, %arg2[%c0_16] : memref<1xf32, #tpu.memory_space<smem>>
    return
  }
}

</mosaic_0001>

<bundles_post_ra>
// kernel: tpu_custom_call.1
= control target key start
LH: loop header
LB: loop body
LE: loop exit
PB: predicated region body
PF: predicated region fallthrough
CT: control target
= control target key end

     0   :  { %7 = vsyncpa [#allocation3], 0  ;;  %s361_s0 = inlined_call_operand.hbm [shape: f32[8,32], index: 0, kind: input, shape index: {}]   ;;  %s362_s1 = inlined_call_operand.hbm [shape: f32[8,32], index: 1, kind: input, shape index: {}]   ;;  %s363_s2 = inlined_call_operand.hbm [shape: f32[1], index: 2, kind: output, shape index: {}]  }
   0x1   :  { %8 = vsyncpa [#allocation6], 0 }
   0x2   :  { %9 = vsyncpa [#allocation4], 0  ;;  %s323_s9 = smov [#allocation2]   ;;  %s324_s11 = smov [#allocation5]  }
   0x3   :  { %s16_s10 = sshll.u32 %s323_s9, 4  ;;  %s26_s12 = sshll.u32 %s324_s11, 4  ;;  %s17_s10 = int_to_ptr.vmem [resolvable:$true] %s16_s10  ;;  %s27_s12 = int_to_ptr.vmem [resolvable:$true] %s26_s12 }
   0x4   :  { %s277_s13 = scalar_lea.vmem %s17_s10, 128  ;;  %p282_p1 = scmp.lt.s32.totalorder %s17_s10, %s17_s10 }
   0x5   :  { %p278_p0 = scmp.ne.s32.totalorder %s17_s10, %s277_s13  ;;  %p283_p2 = scmp.lt.s32.totalorder %s277_s13, %s277_s13 }
   0x7   :  { %p284_p3 = por %p283_p2, %p282_p1 }
   0x9   :  { %p285_p4 = pnand %p284_p3, %p278_p0 }
   0xb   :  { %288 = shalt.err (!%p285_p4)
}
   0xc   :  { %19 = dma.hbm_to_vmem [thread:$0]  %s361_s0, 128, %s17_s10, [#allocation3]  }
   0xd   :  { %s297_s16 = scalar_lea.vmem %s27_s12, 128  ;;  %p302_p6 = scmp.lt.s32.totalorder %s27_s12, %s27_s12 }
   0xe   :  { %p298_p5 = scmp.ne.s32.totalorder %s27_s12, %s297_s16  ;;  %p303_p7 = scmp.lt.s32.totalorder %s297_s16, %s297_s16 }
  0x10   :  { %p304_p8 = por %p303_p7, %p302_p6 }
  0x12   :  { %p305_p9 = pnand %p304_p8, %p298_p5 }
  0x14   :  { %308 = shalt.err (!%p305_p9)
}
  0x15   :  { %29 = dma.hbm_to_vmem [thread:$0]  %s362_s1, 128, %s27_s12, [#allocation6]  }
  0x16   :  { %317 = dma.done.wait [#allocation3], 128  }
  0x17   :  { %318 = vsyncadd [#allocation3], 4294967168 }
  0x18   :  { %319 = dma.done.wait [#allocation6], 128  }
  0x19   :  { %320 = vsyncadd [#allocation6], 4294967168  ;;  %vm38_vm0 = vcmask 261120   ;;  %v52_v0 = vld [vmem:[#allocation5] sm:$0xff]  ;;  %v36_v1 = vld [vmem:[#allocation2] sm:$0xff]  ;;  %vm173_vm5 = vcmask 130048  }
  0x1a   :  { %v53_v2 = vmul.f32 %v52_v0, %v52_v0  ;;  %v37_v3 = vmul.f32 %v36_v1, %v36_v1  ;;  %vm196_vm6 = vcmask 7168   ;;  %s325_s19 = smov [#allocation7]  }
  0x1c   :  { %v54_v4 = vsel %vm38_vm0, %v53_v2, 0.0  ;;  %v39_v5 = vsel %vm38_vm0, %v37_v3, 0.0 }
  0x1d   :  { %55 = vadd.xlane.f32.xlu0 %v54_v4 }
  0x21   :  { %40 = vadd.xlane.f32.xlu0 %v39_v5 }
  0xa6   :  { %v56_v6 = vpop.xlane.xlu0 %55 }
  0xa7   :  { %249 = vrsqrt.f32 %v56_v6  ;;  %vm59_vm1 = vcmp.eq.f32.partialorder %v56_v6, inf  ;;  %v62_v10 = vand.u32 2147483648, %v56_v6  ;;  %vm61_vm2 = vcmp.eq.f32.partialorder %v56_v6, 0.0 }
  0xaa   :  { %v41_v7 = vpop.xlane.xlu0 %40 }
  0xab   :  { %251 = vrsqrt.f32 %v41_v7  ;;  %vm44_vm3 = vcmp.eq.f32.partialorder %v41_v7, inf  ;;  %v47_v16 = vand.u32 2147483648, %v41_v7  ;;  %vm46_vm4 = vcmp.eq.f32.partialorder %v41_v7, 0.0 }
  0xb4   :  { %v250_v8 = vpop.eup %249 }
  0xb5   :  { %v58_v9 = vmul.f32 %v250_v8, %v56_v6 }
  0xb7   :  { %v60_v11 = vsel %vm59_vm1, %v56_v6, %v58_v9 }
  0xb8   :  { %v252_v12 = vpop.eup %251  ;;  %v63_v13 = vsel %vm61_vm2, %v62_v10, %v60_v11 }
  0xb9   :  { %v64_v14 = vmax.f32 %v63_v13, 1e-12  ;;  %v43_v15 = vmul.f32 %v252_v12, %v41_v7 }
  0xbb   :  { %253 = vrcp.f32 %v64_v14  ;;  %v45_v17 = vsel %vm44_vm3, %v41_v7, %v43_v15 }
  0xbc   :  { %v48_v18 = vsel %vm46_vm4, %v47_v16, %v45_v17 }
  0xbd   :  { %v49_v19 = vmax.f32 %v48_v18, 1e-12 }
  0xbf   :  { %255 = vrcp.f32 %v49_v19 }
  0xc8   :  { %v254_v20 = vpop.eup %253 }
  0xc9   :  { %v66_v21 = vmul.f32 %v254_v20, %v52_v0 }
  0xcb   :  { %237 = vmatprep.subr.msk.mxu0 %vm38_vm0, %v66_v21  ;;  %v73_v27 = vmul.f32 %v66_v21, %v66_v21 }
  0xcc   :  { %v256_v22 = vpop.eup %255  ;;  %238 = vmatpush3.xpose.msk.msra.mxu0 %vm38_vm0, %v66_v21 }
  0xcd   :  { %v51_v23 = vmul.f32 %v256_v22, %v36_v1  ;;  %v77_v28 = vsel %vm38_vm0, %v73_v27, 0.0 }
  0xcf   :  { %239 = vmatprep.subr.msk.mxu0 %vm38_vm0, %v51_v23  ;;  %241 = vmatprep.mubr.msk.f32.mxu0 %vm38_vm0, %v51_v23  ;;  %v72_v24 = vmul.f32 %v51_v23, %v51_v23  ;;  %v67_v25 = vmul.f32 %v66_v21, %v51_v23 }
  0xd0   :  { %240 = vmatpush3.xpose.msk.msra.mxu0 %vm38_vm0, %v51_v23 }
  0xd1   :  { %v74_v26 = vsel %vm38_vm0, %v72_v24, 0.0  ;;  %v68_v47 = vsel %vm38_vm0, %v67_v25, 0.0 }
  0xd2   :  { %75 = vadd.xlane.f32.xlu1 %v74_v26 }
  0xd3   :  { %242 = vmatmul.mubr.msk.f32.vlgmr.msra.gmra.mxu0 %vm38_vm0, %v66_v21 }
  0xd6   :  { %78 = vadd.xlane.f32.xlu1 %v77_v28 }
 0x15b   :  { %v76_v29 = vpop.xlane.xlu1 %75 }
 0x15c   :  { %v80_v32 = vmul.f32 2.0, %v76_v29 }
 0x15e   :  { %v165_v37 = vadd.f32 1.0, %v80_v32 }
 0x15f   :  { %v79_v30 = vpop.xlane.xlu1 %78 }
 0x160   :  { %v81_v31 = vmul.f32 2.0, %v79_v30  ;;  %v180_v49 = vsub.f32 %v80_v32, %v165_v37 }
 0x162   :  { %v166_v34 = vadd.f32 1.0, %v81_v31  ;;  %v182_v51 = vmul.f32 1.442695, %v180_v49 }
 0x164   :  { %v181_v48 = vsub.f32 %v81_v31, %v166_v34 }
 0x166   :  { %v184_v50 = vmul.f32 1.442695, %v181_v48 }
 0x193   :  { %v243_v33 = vpop.f32.mrf.mxu0 }
 0x194   :  { %v164_v35 = vmul.f32 2.0, %v243_v33 }
 0x195   :  { %v154_v36 = vpop.f32.mrf.mxu0 }
 0x196   :  { %v168_v38 = vsub.f32 %v164_v35, %v166_v34  ;;  %v163_v39 = vmul.f32 2.0, %v154_v36 }
 0x198   :  { %v171_v40 = vmul.f32 1.442695, %v168_v38  ;;  %v167_v41 = vsub.f32 %v163_v39, %v165_v37 }
 0x19a   :  { %257 = vpow2.f32 %v171_v40  ;;  %v169_v42 = vmul.f32 1.442695, %v167_v41 }
 0x19c   :  { %259 = vpow2.f32 %v169_v42 }
 0x19d   :  { %261 = vpow2.f32 %v184_v50 }
 0x19e   :  { %263 = vpow2.f32 %v182_v51 }
 0x1a7   :  { %v258_v43 = vpop.eup %257 }
 0x1a8   :  { %v177_v44 = vsel %vm173_vm5, %v258_v43, 0.0 }
 0x1a9   :  { %v260_v45 = vpop.eup %259  ;;  %178 = vadd.xlane.f32.xlu1 %v177_v44 }
 0x1aa   :  { %v174_v46 = vsel %vm173_vm5, %v260_v45, 0.0  ;;  %v262_v52 = vpop.eup %261 }
 0x1ab   :  { %175 = vadd.xlane.f32.xlu0 %v174_v46  ;;  %v264_v55 = vpop.eup %263 }
 0x1af   :  { %69 = vadd.xlane.f32.xlu0 %v68_v47 }
 0x232   :  { %v179_v53 = vpop.xlane.xlu1 %178 }
 0x233   :  { %v187_v54 = vsub.f32 %v179_v53, %v262_v52 }
 0x234   :  { %v176_v56 = vpop.xlane.xlu0 %175 }
 0x235   :  { %265 = vlog2.f32 %v187_v54  ;;  %v186_v57 = vsub.f32 %v176_v56, %v264_v55 }
 0x237   :  { %267 = vlog2.f32 %v186_v57 }
 0x238   :  { %v70_v59 = vpop.xlane.xlu0 %69 }
 0x239   :  { %v71_v0 = vmul.f32 2.0, %v70_v59 }
 0x242   :  { %v266_v58 = vpop.eup %265 }
 0x243   :  { %v191_v60 = vmul.f32 0.6931472, %v266_v58 }
 0x244   :  { %v268_v61 = vpop.eup %267 }
 0x245   :  { %v189_v62 = vmul.f32 0.6931472, %v268_v61  ;;  %v193_v63 = vadd.f32 %v191_v60, %v166_v34 }
 0x247   :  { %v192_v1 = vadd.f32 %v189_v62, %v165_v37  ;;  %v195_v2 = vsub.f32 %v193_v63, %v71_v0 }
 0x249   :  { %v194_v3 = vsub.f32 %v192_v1, %v71_v0  ;;  %v198_v5 = vsel %vm196_vm6, %v195_v2, 0.0 }
 0x24b   :  { %v197_v4 = vsel %vm196_vm6, %v194_v3, 0.0 }
 0x24c   :  { %v199_v6 = vadd.f32 %v198_v5, %v197_v4 }
 0x24e   :  { %200 = vadd.xlane.f32.xlu1 %v199_v6 }
 0x2d7   :  { %v201_v7 = vpop.xlane.xlu1 %200 }
 0x2d8   :  { %v202_v8 = vrot.slane %v201_v7, 4 }
 0x2da   :  { %v203_v9 = vadd.f32 %v202_v8, %v201_v7 }
 0x2dc   :  { %v204_v10 = vrot.slane %v203_v9, 2 }
 0x2de   :  { %v205_v11 = vadd.f32 %v204_v10, %v203_v9 }
 0x2e0   :  { %v206_v12 = vrot.slane %v205_v11, 1 }
 0x2e2   :  { %v207_v13 = vadd.f32 %v206_v12, %v205_v11 }
 0x2e4   :  { %244 = vpush %v207_v13 }
 0x315   :  { %s245_s0 = spop %244 }
 0x316   :  { %s211_s1 = smul.f32 0.0625, %s245_s0 }
 0x318   :  { %213 = sst [smem:[#allocation7]] %s211_s1 }
 0x319   :  { %221 = dma.smem_to_hbm %s325_s19, 16, %s363_s2, [#allocation4]  }
 0x31a   :  { %321 = dma.done.wait [#allocation4], 16  }
 0x31b   :  { %322 = vsyncadd [#allocation4], 4294967280 }
 0x31c   :  { %225 = sfence }
 0x31d   :  { %226 = vsyncpa [#allocation3], 1 }
 0x31e   :  { %227 = vsyncpa [#allocation6], 1 }
 0x31f   :  { %228 = vsyncpa [#allocation4], 1 }

</bundles_post_ra>
